<compile_context>
chip_gen: v7x
topology: tpu7x:2x2x1
jax: 0.10.0
libtpu: 0.0.40
codegen_flags: <defaults>
</compile_context>

<pallas_src>
import functools

import jax
import jax.numpy as jnp
from jax.experimental import pallas as pl
from jax.experimental.pallas import tpu as pltpu

SUBLANE = 8


def _round_up(n, m):
    return ((n + m - 1) // m) * m


def _cdiv(a, b):
    return -(-a // b)


def _leaky_relu(x, negative_slope=0.2):
    # Matches nn.LeakyReLU(0.2) in the PyTorch module.
    return jnp.where(x > 0, x, negative_slope * x)


def predictor_kernel(x_ref, w1_ref, b1_ref, w2_ref, b2_ref, w3_ref, b3_ref,
                     o_ref):
    """Fused 3-layer MLP on one tile of rows of x."""
    x = x_ref[...]

    # Layer 1: Linear + LeakyReLU(0.2)   (dropout = identity in eval mode)
    h = jnp.dot(x, w1_ref[...], preferred_element_type=jnp.float32)
    h = _leaky_relu(h + b1_ref[...].astype(jnp.float32))   # (1,H1) broadcasts

    # Layer 2: Linear + LeakyReLU(0.2)
    h = jnp.dot(h.astype(w2_ref.dtype), w2_ref[...],
                preferred_element_type=jnp.float32)
    h = _leaky_relu(h + b2_ref[...].astype(jnp.float32))

    # Layer 3: Linear + Sigmoid
    h = jnp.dot(h.astype(w3_ref.dtype), w3_ref[...],
                preferred_element_type=jnp.float32)
    h = h + b3_ref[...].astype(jnp.float32)
    o_ref[...] = jax.nn.sigmoid(h).astype(o_ref.dtype)


def _choose_tile_m(B, target=2048):
    """Row tile: single block for small batches; near-full last block + >=2
    grid steps (megacore) for large batches."""
    if B < 1024:
        return B
    nblocks = max(2, _cdiv(B, target))
    return _round_up(_cdiv(B, nblocks), SUBLANE)


@functools.partial(jax.jit, static_argnames=("tile_m", "compute_dtype"))
def predictor_forward(x, w1, b1, w2, b2, w3, b3, *, tile_m=None,
                      compute_dtype=None):
    """x: [B, input_size].  Weights w_i: [in, out], biases b_i: [1, out].

    compute_dtype=jnp.bfloat16 feeds the MXU in bf16 (half the HBM bytes) while
    keeping f32 accumulation / bias / activation / sigmoid math.
    """
    B, in_size = x.shape
    h1 = w1.shape[1]
    h2 = w2.shape[1]
    out_size = w3.shape[1]
    out_dtype = x.dtype          # result matches the caller's dtype

    if compute_dtype is not None:
        x = x.astype(compute_dtype)
        w1 = w1.astype(compute_dtype)
        w2 = w2.astype(compute_dtype)
        w3 = w3.astype(compute_dtype)
        # Biases stay as given; the kernel promotes them to f32 anyway.

    if tile_m is None:
        tile_m = _choose_tile_m(B)
    tile_m = max(1, min(tile_m, B))
    B_p = _round_up(B, tile_m)

    # Row padding only (no feature padding), and only when needed.
    if B_p != B:
        x = jnp.pad(x, ((0, B_p - B), (0, 0)))

    grid = (B_p // tile_m,)

    # Weights/biases are small relative to VMEM -> full (untiled) blocks,
    # resident across the whole grid via a constant index map.
    full = lambda shape: pl.BlockSpec(shape, lambda i: (0, 0))

    x_itemsize = x.dtype.itemsize
    weight_bytes = sum(a.size * a.dtype.itemsize
                       for a in (w1, b1, w2, b2, w3, b3))
    flops = 2 * B_p * (in_size * h1 + h1 * h2 + h2 * out_size)
    bytes_accessed = (x.size * x_itemsize + weight_bytes
                      + B_p * out_size * out_dtype.itemsize)

    # Double-buffered x/out tiles + (possibly double-buffered) resident weights.
    vmem_needed = (2 * tile_m * (in_size * x_itemsize
                                 + out_size * out_dtype.itemsize)
                   + 2 * weight_bytes)
    vmem_limit = None
    if vmem_needed > 24 * 1024 * 1024:
        vmem_limit = min(int(vmem_needed * 1.25) + (2 << 20), 100 * 1024 * 1024)

    out_full = pl.pallas_call(
        predictor_kernel,
        out_shape=jax.ShapeDtypeStruct((B_p, out_size), out_dtype),
        grid_spec=pltpu.PrefetchScalarGridSpec(
            num_scalar_prefetch=0,
            grid=grid,
            in_specs=[
                pl.BlockSpec((tile_m, in_size), lambda i: (i, 0)),   # x tile
                full((in_size, h1)), full((1, h1)),                  # layer 1
                full((h1, h2)),      full((1, h2)),                  # layer 2
                full((h2, out_size)), full((1, out_size)),           # layer 3
            ],
            out_specs=pl.BlockSpec((tile_m, out_size), lambda i: (i, 0)),
        ),
        compiler_params=pltpu.CompilerParams(
            dimension_semantics=("parallel",),
            vmem_limit_bytes=vmem_limit),
        cost_estimate=pl.CostEstimate(
            flops=flops,
            transcendentals=B_p * out_size,      # sigmoid
            bytes_accessed=bytes_accessed),
    )(x, w1, b1, w2, b2, w3, b3)

    if B_p != B:
        out_full = out_full[:B]
    return out_full


def init_linear(key, fan_in, fan_out):
    """Deterministic init mimicking nn.Linear: U(-1/sqrt(fan_in), 1/sqrt(fan_in))."""
    kw, kb = jax.random.split(key)
    bound = 1.0 / jnp.sqrt(jnp.float32(fan_in))
    # Stored as [in, out] (transpose of PyTorch's [out, in]).
    w = jax.random.uniform(kw, (fan_in, fan_out), jnp.float32, -bound, bound)
    b = jax.random.uniform(kb, (1, fan_out), jnp.float32, -bound, bound)
    return w, b


def reference_forward(x, w1, b1, w2, b2, w3, b3):
    h = _leaky_relu(x @ w1 + b1)
    h = _leaky_relu(h @ w2 + b2)
    return jax.nn.sigmoid(h @ w3 + b3)


if __name__ == "__main__":
    # Small shapes consistent with Predictor(input_size, h1, h2, output_size).
    batch, input_size, hidden1, hidden2, output_size = 16, 32, 64, 48, 16

    key = jax.random.PRNGKey(0)
    kx, k1, k2, k3 = jax.random.split(key, 4)

    x = jax.random.normal(kx, (batch, input_size), jnp.float32)
    w1, b1 = init_linear(k1, input_size, hidden1)
    w2, b2 = init_linear(k2, hidden1, hidden2)
    w3, b3 = init_linear(k3, hidden2, output_size)

    ref = reference_forward(x, w1, b1, w2, b2, w3, b3)

    # f32 path: single block, no padding, tight tolerance.
    out = predictor_forward(x, w1, b1, w2, b2, w3, b3)
    out = jax.block_until_ready(out)
    assert out.shape == (batch, output_size)
    assert jnp.allclose(out, ref, atol=1e-5, rtol=1e-5), "f32 mismatch vs reference"

    # bf16 mixed-precision path (bandwidth optimization), f32 accumulation.
    out_bf16 = predictor_forward(x, w1, b1, w2, b2, w3, b3,
                                 compute_dtype=jnp.bfloat16)
    out_bf16 = jax.block_until_ready(out_bf16)
    assert jnp.allclose(out_bf16.astype(jnp.float32), ref,
                        atol=3e-2, rtol=3e-2), "bf16 mismatch vs reference"

    # Multi-block grid with conditional row padding (B=20, tile_m=8 -> grid=(3,)).
    x2 = jax.random.normal(kx, (20, input_size), jnp.float32)
    ref2 = reference_forward(x2, w1, b1, w2, b2, w3, b3)
    out2 = jax.block_until_ready(
        predictor_forward(x2, w1, b1, w2, b2, w3, b3, tile_m=8))
    assert out2.shape == (20, output_size)
    assert jnp.allclose(out2, ref2, atol=1e-5, rtol=1e-5), "tiled mismatch vs reference"

    print("KERNEL_OK")
</pallas_src>

<mosaic_0001>
module attributes {stable_mosaic.version = 11 : i64} {
  func.func @predictor_kernel(%arg0: i32, %arg1: memref<16x32xf32, #tpu.memory_space<vmem>>, %arg2: memref<32x64xf32, #tpu.memory_space<vmem>>, %arg3: memref<1x64xf32, #tpu.memory_space<vmem>>, %arg4: memref<64x48xf32, #tpu.memory_space<vmem>>, %arg5: memref<1x48xf32, #tpu.memory_space<vmem>>, %arg6: memref<48x16xf32, #tpu.memory_space<vmem>>, %arg7: memref<1x16xf32, #tpu.memory_space<vmem>>, %arg8: memref<16x16xf32, #tpu.memory_space<vmem>>) attributes {dimension_semantics = [#tpu.dimension_semantics<parallel>], iteration_bounds = array<i64: 1>, scalar_prefetch = 0 : i64, scratch_operands = 0 : i64, tpu.core_type = #tpu.core_type<tc>, window_params = [{transform_indices = @transform_0, window_bounds = array<i64: 16, 32>}, {pipeline_mode = #tpu.pipeline_mode<synchronous>, transform_indices = @transform_1, window_bounds = array<i64: 32, 64>}, {pipeline_mode = #tpu.pipeline_mode<synchronous>, transform_indices = @transform_2, window_bounds = array<i64: 1, 64>}, {pipeline_mode = #tpu.pipeline_mode<synchronous>, transform_indices = @transform_3, window_bounds = array<i64: 64, 48>}, {pipeline_mode = #tpu.pipeline_mode<synchronous>, transform_indices = @transform_4, window_bounds = array<i64: 1, 48>}, {pipeline_mode = #tpu.pipeline_mode<synchronous>, transform_indices = @transform_5, window_bounds = array<i64: 48, 16>}, {pipeline_mode = #tpu.pipeline_mode<synchronous>, transform_indices = @transform_6, window_bounds = array<i64: 1, 16>}, {transform_indices = @transform_7, window_bounds = array<i64: 16, 16>}]} {
    %c0 = arith.constant 0 : index
    %c0_0 = arith.constant 0 : index
    %0 = vector.load %arg1[%c0, %c0_0] : memref<16x32xf32, #tpu.memory_space<vmem>>, vector<16x32xf32>
    %c0_1 = arith.constant 0 : index
    %c0_2 = arith.constant 0 : index
    %1 = vector.load %arg2[%c0_1, %c0_2] : memref<32x64xf32, #tpu.memory_space<vmem>>, vector<32x64xf32>
    %cst = arith.constant dense<0.000000e+00> : vector<16x64xf32>
    %2 = tpu.matmul %0, %1, %cst {dimension_numbers = #tpu.dot_dimension_numbers<[1], [0], [0], [1], [0, 0, 1, 1], [], []>} : vector<16x32xf32>, vector<32x64xf32>, vector<16x64xf32> -> vector<16x64xf32>
    %c0_3 = arith.constant 0 : index
    %c0_4 = arith.constant 0 : index
    %3 = vector.load %arg3[%c0_3, %c0_4] : memref<1x64xf32, #tpu.memory_space<vmem>>, vector<1x64xf32>
    %4 = vector.broadcast %3 : vector<1x64xf32> to vector<16x64xf32>
    %5 = arith.addf %2, %4 : vector<16x64xf32>
    %cst_5 = arith.constant 0.000000e+00 : f32
    %6 = vector.broadcast %cst_5 : f32 to vector<16x64xf32>
    %7 = arith.cmpf ogt, %5, %6 : vector<16x64xf32>
    %cst_6 = arith.constant 2.000000e-01 : f32
    %8 = vector.broadcast %cst_6 : f32 to vector<16x64xf32>
    %9 = arith.mulf %8, %5 : vector<16x64xf32>
    %10 = arith.select %7, %5, %9 : vector<16x64xi1>, vector<16x64xf32>
    %c0_7 = arith.constant 0 : index
    %c0_8 = arith.constant 0 : index
    %11 = vector.load %arg4[%c0_7, %c0_8] : memref<64x48xf32, #tpu.memory_space<vmem>>, vector<64x48xf32>
    %cst_9 = arith.constant dense<0.000000e+00> : vector<16x48xf32>
    %12 = tpu.matmul %10, %11, %cst_9 {dimension_numbers = #tpu.dot_dimension_numbers<[1], [0], [0], [1], [0, 0, 1, 1], [], []>} : vector<16x64xf32>, vector<64x48xf32>, vector<16x48xf32> -> vector<16x48xf32>
    %c0_10 = arith.constant 0 : index
    %c0_11 = arith.constant 0 : index
    %13 = vector.load %arg5[%c0_10, %c0_11] : memref<1x48xf32, #tpu.memory_space<vmem>>, vector<1x48xf32>
    %14 = vector.broadcast %13 : vector<1x48xf32> to vector<16x48xf32>
    %15 = arith.addf %12, %14 : vector<16x48xf32>
    %cst_12 = arith.constant 0.000000e+00 : f32
    %16 = vector.broadcast %cst_12 : f32 to vector<16x48xf32>
    %17 = arith.cmpf ogt, %15, %16 : vector<16x48xf32>
    %cst_13 = arith.constant 2.000000e-01 : f32
    %18 = vector.broadcast %cst_13 : f32 to vector<16x48xf32>
    %19 = arith.mulf %18, %15 : vector<16x48xf32>
    %20 = arith.select %17, %15, %19 : vector<16x48xi1>, vector<16x48xf32>
    %c0_14 = arith.constant 0 : index
    %c0_15 = arith.constant 0 : index
    %21 = vector.load %arg6[%c0_14, %c0_15] : memref<48x16xf32, #tpu.memory_space<vmem>>, vector<48x16xf32>
    %cst_16 = arith.constant dense<0.000000e+00> : vector<16x16xf32>
    %22 = tpu.matmul %20, %21, %cst_16 {dimension_numbers = #tpu.dot_dimension_numbers<[1], [0], [0], [1], [0, 0, 1, 1], [], []>} : vector<16x48xf32>, vector<48x16xf32>, vector<16x16xf32> -> vector<16x16xf32>
    %c0_17 = arith.constant 0 : index
    %c0_18 = arith.constant 0 : index
    %23 = vector.load %arg7[%c0_17, %c0_18] : memref<1x16xf32, #tpu.memory_space<vmem>>, vector<1x16xf32>
    %24 = vector.broadcast %23 : vector<1x16xf32> to vector<16x16xf32>
    %25 = arith.addf %22, %24 : vector<16x16xf32>
    %26 = arith.negf %25 : vector<16x16xf32>
    %27 = math.exp %26 : vector<16x16xf32>
    %cst_19 = arith.constant 1.000000e+00 : f32
    %28 = vector.broadcast %cst_19 : f32 to vector<16x16xf32>
    %29 = arith.addf %28, %27 : vector<16x16xf32>
    %30 = arith.divf %28, %29 : vector<16x16xf32>
    %c0_20 = arith.constant 0 : index
    %c0_21 = arith.constant 0 : index
    %31 = vector.load %arg8[%c0_20, %c0_21] : memref<16x16xf32, #tpu.memory_space<vmem>>, vector<16x16xf32>
    tpu.vector_store %arg8[%c0_20, %c0_21], %30 {strides = array<i32>} : memref<16x16xf32, #tpu.memory_space<vmem>>, vector<16x16xf32>,
    return
  }
  func.func @transform_0(%arg0: i32) -> (i32, i32) {
    %c0_i32 = arith.constant 0 : i32
    %c0_i32_0 = arith.constant 0 : i32
    return %arg0, %c0_i32 : i32, i32
  }
  func.func @transform_1(%arg0: i32) -> (i32, i32) {
    %c0_i32 = arith.constant 0 : i32
    %c0_i32_0 = arith.constant 0 : i32
    %c0_i32_1 = arith.constant 0 : i32
    return %c0_i32, %c0_i32_0 : i32, i32
  }
  func.func @transform_2(%arg0: i32) -> (i32, i32) {
    %c0_i32 = arith.constant 0 : i32
    %c0_i32_0 = arith.constant 0 : i32
    %c0_i32_1 = arith.constant 0 : i32
    return %c0_i32, %c0_i32_0 : i32, i32
  }
  func.func @transform_3(%arg0: i32) -> (i32, i32) {
    %c0_i32 = arith.constant 0 : i32
    %c0_i32_0 = arith.constant 0 : i32
    %c0_i32_1 = arith.constant 0 : i32
    return %c0_i32, %c0_i32_0 : i32, i32
  }
  func.func @transform_4(%arg0: i32) -> (i32, i32) {
    %c0_i32 = arith.constant 0 : i32
    %c0_i32_0 = arith.constant 0 : i32
    %c0_i32_1 = arith.constant 0 : i32
    return %c0_i32, %c0_i32_0 : i32, i32
  }
  func.func @transform_5(%arg0: i32) -> (i32, i32) {
    %c0_i32 = arith.constant 0 : i32
    %c0_i32_0 = arith.constant 0 : i32
    %c0_i32_1 = arith.constant 0 : i32
    return %c0_i32, %c0_i32_0 : i32, i32
  }
  func.func @transform_6(%arg0: i32) -> (i32, i32) {
    %c0_i32 = arith.constant 0 : i32
    %c0_i32_0 = arith.constant 0 : i32
    %c0_i32_1 = arith.constant 0 : i32
    return %c0_i32, %c0_i32_0 : i32, i32
  }
  func.func @transform_7(%arg0: i32) -> (i32, i32) {
    %c0_i32 = arith.constant 0 : i32
    %c0_i32_0 = arith.constant 0 : i32
    return %arg0, %c0_i32 : i32, i32
  }
}

</mosaic_0001>

<bundles_post_ra>
// kernel: predictor_forward.1
= control target key start
LH: loop header
LB: loop body
LE: loop exit
PB: predicated region body
PF: predicated region fallthrough
CT: control target
= control target key end

     0   :  { %vm40_vm0 = vcmask 261120   ;;  %s634_s0 = inlined_call_operand.vmem [shape: f32[16,32], index: 0, kind: input, shape index: {}]   ;;  %s635_s1 = inlined_call_operand.vmem [shape: f32[32,64], index: 1, kind: input, shape index: {}]   ;;  %s636_s2 = inlined_call_operand.vmem [shape: f32[1,64], index: 2, kind: input, shape index: {}]   ;;  %s637_s3 = inlined_call_operand.vmem [shape: f32[64,48], index: 3, kind: input, shape index: {}]   ;;  %s638_s4 = inlined_call_operand.vmem [shape: f32[1,48], index: 4, kind: input, shape index: {}]   ;;  %s639_s5 = inlined_call_operand.vmem [shape: f32[48,16], index: 5, kind: input, shape index: {}]   ;;  %s640_s6 = inlined_call_operand.vmem [shape: f32[1,16], index: 6, kind: input, shape index: {}]   ;;  %s641_s7 = inlined_call_operand.hbm [shape: f32[16,16], index: 7, kind: output, shape index: {}]  }
   0x1   :  { %v29_v0 = vld [vmem:[%s635_s1] sm:$0xff]  ;;  %v30_v1 = vld [vmem:[%s635_s1 + $0x8] sm:$0xff]  ;;  %v31_v2 = vld [vmem:[%s635_s1 + $0x10] sm:$0xff] }
   0x2   :  { %v437_v3 = vpack.c.bf16 %v30_v1, %v29_v0  ;;  %v32_v4 = vld [vmem:[%s635_s1 + $0x18] sm:$0xff]  ;;  %v27_v5 = vld [vmem:[%s634_s0] sm:$0xff]  ;;  %v129_v8 = vld [vmem:[%s637_s3 + $0x8] sm:$0xff] }
   0x3   :  { %v441_v6 = vpack.c.bf16 %v32_v4, %v31_v2  ;;  %400 = vmatprep.mubr.msk.f32.mxu0 %vm40_vm0, %v27_v5  ;;  %v128_v7 = vld [vmem:[%s637_s3] sm:$0xff]  ;;  %v130_v9 = vld [vmem:[%s637_s3 + $0x10] sm:$0xff]  ;;  %v131_v11 = vld [vmem:[%s637_s3 + $0x18] sm:$0xff] }
   0x4   :  { %438 = vmatprep.subr.bf16.mxu0 %v437_v3  ;;  %v445_v10 = vpack.c.bf16 %v129_v8, %v128_v7 }
   0x5   :  { %12 = vsyncpa [#allocation3], 0  ;;  %440 = vmatpush3.bf16.msra.mxu0 %v437_v3  ;;  %v449_v12 = vpack.c.bf16 %v131_v11, %v130_v9  ;;  %v28_v13 = vld [vmem:[%s634_s0 + $0x8] sm:$0xff]  ;;  %v132_v14 = vld [vmem:[%s637_s3 + $0x20] sm:$0xff]  ;;  %vm143_vm3 = vcmask 523264   ;;  %vm244_vm6 = vcmask 392192  }
   0x6   :  { %442 = vmatprep.subr.bf16.mxu0 %v441_v6  ;;  %446 = vmatprep.subr.bf16.mxu1 %v445_v10  ;;  %v133_v15 = vld [vmem:[%s637_s3 + $0x28] sm:$0xff]  ;;  %v134_v17 = vld [vmem:[%s637_s3 + $0x30] sm:$0xff]  ;;  %v135_v18 = vld [vmem:[%s637_s3 + $0x38] sm:$0xff]  ;;  %vm338_vm7 = vcmask 130048  }
   0x7   :  { %448 = vmatpush3.bf16.msra.mxu1 %v445_v10  ;;  %v453_v16 = vpack.c.bf16 %v133_v15, %v132_v14  ;;  %v457_v19 = vpack.c.bf16 %v135_v18, %v134_v17  ;;  %v231_v20 = vld [vmem:[%s639_s5] sm:$0xff]  ;;  %v232_v21 = vld [vmem:[%s639_s5 + $0x8] sm:$0xff]  ;;  %v233_v32 = vld [vmem:[%s639_s5 + $0x10] sm:$0xff] }
   0x8   :  { %450 = vmatprep.subr.bf16.mxu1 %v449_v12  ;;  %v461_v22 = vpack.c.bf16 %v232_v21, %v231_v20  ;;  %v357_v23 = vld [vmem:[%s636_s2] ss:$0 sm:$0xff]  ;;  %v234_v33 = vld [vmem:[%s639_s5 + $0x18] sm:$0xff]  ;;  %v236_v36 = vld [vmem:[%s639_s5 + $0x28] sm:$0xff] }
   0x9   :  { %444 = vmatpush3.bf16.msra.mxu0 %v441_v6  ;;  %v465_v34 = vpack.c.bf16 %v234_v33, %v233_v32  ;;  %v235_v35 = vld [vmem:[%s639_s5 + $0x20] sm:$0xff] }
   0xa   :  { %462 = vmatprep.subr.bf16.mxu0 %v461_v22  ;;  %v469_v37 = vpack.c.bf16 %v236_v36, %v235_v35  ;;  %v360_v38 = vld [vmem:[%s638_s4] ss:$0 sm:$0xff]  ;;  %s508_s4 = smov [#allocation2]  }
   0xb   :  { %452 = vmatpush3.bf16.msra.mxu1 %v449_v12  ;;  %v363_v47 = vld [vmem:[%s640_s6] ss:$0 sm:$0xff]  ;;  %s346_s18 = sshll.u32 %s508_s4, 4  ;;  %s347_s18 = int_to_ptr.vmem [resolvable:$true] %s346_s18 }
   0xc   :  { %401 = vmatmul.mubr.msk.f32.vlgmr.msra.gmra.mrb[0].mxu0 %vm40_vm0, %v28_v13  ;;  %454 = vmatprep.subr.bf16.mxu1 %v453_v16  ;;  %s484_s6 = scalar_lea.vmem %s347_s18, 256  ;;  %p489_p1 = scmp.lt.s32.totalorder %s347_s18, %s347_s18 }
   0xd   :  { %464 = vmatpush3.bf16.msra.mxu0 %v461_v22  ;;  %p485_p0 = scmp.ne.s32.totalorder %s347_s18, %s484_s6  ;;  %p490_p2 = scmp.lt.s32.totalorder %s484_s6, %s484_s6 }
   0xe   :  { %466 = vmatprep.subr.bf16.mxu0 %v465_v34 }
   0xf   :  { %456 = vmatpush3.bf16.msra.mxu1 %v453_v16  ;;  %p491_p3 = por %p490_p2, %p489_p1 }
  0x10   :  { %458 = vmatprep.subr.bf16.mxu1 %v457_v19 }
  0x11   :  { %468 = vmatpush3.bf16.msra.mxu0 %v465_v34  ;;  %p492_p4 = pnand %p491_p3, %p485_p0 }
  0x12   :  { %470 = vmatprep.subr.bf16.mxu0 %v469_v37 }
  0x13   :  { %460 = vmatpush3.bf16.msra.mxu1 %v457_v19 }
  0x15   :  { %472 = vmatpush3.bf16.msra.mxu0 %v469_v37 }
  0xdf   :  { %v402_v24 = vpop.f32.mrb[0].mxu0 }
  0xe0   :  { %v119_v25 = vadd.f32 %v402_v24, %v357_v23  ;;  %v113_v26 = vpop.f32.mrb[1].mxu0 }
  0xe1   :  { %v114_v27 = vadd.f32 %v357_v23, %v113_v26 }
  0xe2   :  { %v125_v28 = vmul.f32 0.2, %v119_v25  ;;  %vm123_vm1 = vcmp.gt.f32.partialorder %v119_v25, 0.0 }
  0xe3   :  { %vm122_vm2 = vcmp.gt.f32.partialorder %v114_v27, 0.0  ;;  %v124_v29 = vmul.f32 0.2, %v114_v27 }
  0xe4   :  { %v127_v31 = vsel %vm123_vm1, %v119_v25, %v125_v28 }
  0xe5   :  { %v126_v30 = vsel %vm122_vm2, %v114_v27, %v124_v29 }
  0xe6   :  { %419 = vmatprep.mubr.msk.f32.mxu1 %vm143_vm3, %v126_v30 }
  0xe7   :  { %420 = vmatmul.mubr.msk.f32.vlgmr.msra.gmra.mrb[0].mxu1 %vm143_vm3, %v127_v31 }
 0x1ba   :  { %v421_v39 = vpop.f32.mrb[0].mxu1 }
 0x1bb   :  { %v222_v40 = vadd.f32 %v421_v39, %v360_v38  ;;  %v216_v41 = vpop.f32.mrb[1].mxu1 }
 0x1bc   :  { %v217_v42 = vadd.f32 %v360_v38, %v216_v41 }
 0x1bd   :  { %v228_v43 = vmul.f32 0.2, %v222_v40  ;;  %vm226_vm4 = vcmp.gt.f32.partialorder %v222_v40, 0.0 }
 0x1be   :  { %vm225_vm5 = vcmp.gt.f32.partialorder %v217_v42, 0.0  ;;  %v227_v44 = vmul.f32 0.2, %v217_v42 }
 0x1bf   :  { %v230_v46 = vsel %vm226_vm4, %v222_v40, %v228_v43 }
 0x1c0   :  { %v229_v45 = vsel %vm225_vm5, %v217_v42, %v227_v44 }
 0x1c1   :  { %434 = vmatprep.mubr.msk.f32.mxu0 %vm244_vm6, %v229_v45 }
 0x1c2   :  { %435 = vmatmul.mubr.msk.f32.vlgmr.msra.gmra.mrb[2].mxu0 %vm244_vm6, %v230_v46 }
 0x295   :  { %v436_v48 = vpop.f32.mrb[2].mxu0 }
 0x296   :  { %v323_v49 = vadd.f32 %v436_v48, %v363_v47  ;;  %v317_v50 = vpop.f32.mrb[3].mxu0 }
 0x297   :  { %v318_v51 = vadd.f32 %v363_v47, %v317_v50 }
 0x298   :  { %v367_v52 = vmul.f32 -1.442695, %v323_v49 }
 0x299   :  { %v366_v53 = vmul.f32 -1.442695, %v318_v51 }
 0x29a   :  { %476 = vpow2.f32 %v367_v52 }
 0x29b   :  { %478 = vpow2.f32 %v366_v53 }
 0x2a4   :  { %v477_v54 = vpop.eup %476 }
 0x2a5   :  { %v479_v55 = vpop.eup %478  ;;  %v333_v56 = vadd.f32 1.0, %v477_v54 }
 0x2a6   :  { %v332_v57 = vadd.f32 1.0, %v479_v55 }
 0x2a7   :  { %480 = vrcp.f32 %v333_v56 }
 0x2a8   :  { %482 = vrcp.f32 %v332_v57 }
 0x2b1   :  { %v481_v58 = vpop.eup %480 }
 0x2b2   :  { %v483_v59 = vpop.eup %482  ;;  %340 = vst.msk [vmem:[#allocation2 + $0x8] sm:$0xff] %vm338_vm7, %v481_v58 }
 0x2b3   :  { %339 = vst.msk [vmem:[#allocation2] sm:$0xff] %vm338_vm7, %v483_v59 }
 0x2b4   :  { %495 = shalt.err (!%p492_p4)
}
 0x2b5   :  { %s496_s21 = scalar_lea.hbm %s641_s7, 256 }
 0x2b6   :  { %p497_p5 = scmp.ne.s32.totalorder %s641_s7, %s496_s21  ;;  %p500_p6 = scmp.lt.u32.totalorder %s496_s21, %s641_s7 }
 0x2b8   :  { %p502_p7 = pnand %p500_p6, %p497_p5 }
 0x2ba   :  { %505 = shalt.err (!%p502_p7)
}
 0x2bb   :  { %s509_s26 = smov 128   ;;  %s510_s0 = smov 8  }
 0x2bc   :  { %352 = dma.vmem_to_hbm [thread:$0]  %s347_s18, 256, %s641_s7, [#allocation3], %s509_s26, %s509_s26, %s510_s0  }
 0x2bd   :  { %506 = dma.done.wait [#allocation3], 256  }
 0x2be   :  { %507 = vsyncadd [#allocation3], 4294967040 }
 0x2bf   :  { %356 = vsyncpa [#allocation3], 1 }

</bundles_post_ra>
